<compile_context>
chip_gen: v6e
topology: v6e:2x2x1
jax: 0.10.0
libtpu: 0.0.40
codegen_flags: <defaults>
</compile_context>

<pallas_src>
import functools

import jax
import jax.numpy as jnp
from jax.experimental import pallas as pl
from jax.experimental.pallas import tpu as pltpu

_LANES = 128
# (2048, 128) f32 tile = 1 MiB per input; x2 inputs x2 pipeline buffers = 4 MiB
# of VMEM -- comfortably inside the default scoped limit on v5e/v6e/v7x.
_MAX_BLOCK_ROWS = 2048


def _partial_sums_kernel(sw_ref, tgt_ref, num_ref, den_ref, *,
                         block_rows, total_rows, need_row_mask):
    # Mask on the native-dtype tile; cast slide_window to f32 only after load
    # (keeps HBM traffic at the input's native width, e.g. bf16).
    valid = tgt_ref[...] >= 0
    if need_row_mask:
        # Last grid block may extend past the real row count: zero out those
        # rows (jnp.where, not a multiply, so garbage NaNs can't leak in).
        row = jax.lax.broadcasted_iota(jnp.int32, (block_rows, _LANES), 0)
        row = row + pl.program_id(0) * block_rows
        valid = valid & (row < total_rows)

    sw = jnp.where(valid, sw_ref[...].astype(jnp.float32), 0.0)
    cnt = valid.astype(jnp.float32)

    # Reduce rows -> (1, 128) vector partials; the final cross-lane reduction
    # and the divide are deferred to the wrapper.
    num_ref[0] = jnp.sum(sw, axis=0, keepdims=True)
    den_ref[0] = jnp.sum(cnt, axis=0, keepdims=True)


@jax.jit
def slide_window_sum_pallas(slide_window, targets):
    """Returns the scalar masked-mean loss (float32)."""
    assert slide_window.shape == targets.shape

    n = slide_window.size
    sw_flat = slide_window.reshape(-1)
    tgt_flat = targets.reshape(-1)

    rows = n // _LANES
    n_main = rows * _LANES
    rem = n - n_main

    num = jnp.float32(0.0)
    den = jnp.float32(0.0)

    # Lane remainder (< 128 elements): tiny plain-JAX reduction, avoids
    # padding (and thus copying) the full arrays in HBM.
    if rem:
        rem_valid = tgt_flat[n_main:] >= 0
        num = num + jnp.sum(
            jnp.where(rem_valid, sw_flat[n_main:].astype(jnp.float32), 0.0))
        den = den + jnp.sum(rem_valid.astype(jnp.float32))

    if rows > 0:
        if rem:
            sw_main = sw_flat[:n_main]
            tgt_main = tgt_flat[:n_main]
        else:
            sw_main, tgt_main = sw_flat, tgt_flat

        sw2d = sw_main.reshape(rows, _LANES)
        tgt2d = tgt_main.reshape(rows, _LANES)

        # Block = full array when it fits (allowed even if rows % 8 != 0),
        # otherwise fixed large blocks (multiple of 8) with a tail mask.
        block_rows = rows if rows <= _MAX_BLOCK_ROWS else _MAX_BLOCK_ROWS
        nb = (rows + block_rows - 1) // block_rows
        need_row_mask = (rows % block_rows) != 0

        kernel = functools.partial(
            _partial_sums_kernel,
            block_rows=block_rows,
            total_rows=rows,
            need_row_mask=need_row_mask,
        )

        num_parts, den_parts = pl.pallas_call(
            kernel,
            grid=(nb,),
            in_specs=[
                pl.BlockSpec((block_rows, _LANES), lambda b: (b, 0)),
                pl.BlockSpec((block_rows, _LANES), lambda b: (b, 0)),
            ],
            out_specs=[
                pl.BlockSpec((1, 1, _LANES), lambda b: (b, 0, 0)),
                pl.BlockSpec((1, 1, _LANES), lambda b: (b, 0, 0)),
            ],
            out_shape=[
                jax.ShapeDtypeStruct((nb, 1, _LANES), jnp.float32),
                jax.ShapeDtypeStruct((nb, 1, _LANES), jnp.float32),
            ],
            compiler_params=pltpu.CompilerParams(
                # No carried state -> reduction axis can be "parallel"
                # (megacore split on v7x, no effect on v5e/v6e).
                dimension_semantics=("parallel",),
                # Explicit, portable VMEM budget (well under v7x's 64 MiB).
                vmem_limit_bytes=32 * 1024 * 1024,
            ),
        )(sw2d, tgt2d)

        num = num + jnp.sum(num_parts)
        den = den + jnp.sum(den_parts)

    return num / den


def slide_window_sum_forward(slide_window, targets):
    """Full module forward: (loss, {'slide_window Loss': loss})."""
    loss = slide_window_sum_pallas(slide_window, targets)
    # Keep the device scalar in the log dict (no device->host sync in the hot
    # path); convert with float() lazily at logging time if needed.
    return loss, {"slide_window Loss": loss}


if __name__ == "__main__":
    key = jax.random.PRNGKey(0)
    k1, k2 = jax.random.split(key)

    # Small NCHW-shaped inputs consistent with the module's elementwise use.
    shape = (2, 4, 16, 16)
    slide_window = jax.random.normal(k1, shape, dtype=jnp.float32)
    # targets with mixed sign so the mask is non-trivial.
    targets = jax.random.normal(k2, shape, dtype=jnp.float32)

    loss, log_dict = slide_window_sum_forward(slide_window, targets)
    loss = jax.block_until_ready(loss)

    # Reference check in plain JAX.
    mask = (targets >= 0).astype(jnp.float32)
    ref = jnp.sum(slide_window * mask) / jnp.sum(mask)
    assert jnp.allclose(loss, ref, rtol=1e-5, atol=1e-5), (loss, ref)

    print("KERNEL_OK")
</pallas_src>

<mosaic_0001>
module attributes {stable_mosaic.version = 11 : i64} {
  func.func @_partial_sums_kernel(%arg0: i32, %arg1: memref<16x128xf32, #tpu.memory_space<vmem>>, %arg2: memref<16x128xf32, #tpu.memory_space<vmem>>, %arg3: memref<1x1x128xf32, #tpu.memory_space<vmem>>, %arg4: memref<1x1x128xf32, #tpu.memory_space<vmem>>) attributes {dimension_semantics = [#tpu.dimension_semantics<parallel>], iteration_bounds = array<i64: 1>, scalar_prefetch = 0 : i64, scratch_operands = 0 : i64, tpu.core_type = #tpu.core_type<tc>, window_params = [{transform_indices = @transform_0, window_bounds = array<i64: 16, 128>}, {transform_indices = @transform_1, window_bounds = array<i64: 16, 128>}, {transform_indices = @transform_2, window_bounds = array<i64: 1, 1, 128>}, {transform_indices = @transform_3, window_bounds = array<i64: 1, 1, 128>}]} {
    %c0 = arith.constant 0 : index
    %c0_0 = arith.constant 0 : index
    %0 = vector.load %arg2[%c0, %c0_0] : memref<16x128xf32, #tpu.memory_space<vmem>>, vector<16x128xf32>
    %cst = arith.constant 0.000000e+00 : f32
    %1 = vector.broadcast %cst : f32 to vector<16x128xf32>
    %2 = arith.cmpf oge, %0, %1 : vector<16x128xf32>
    %c0_1 = arith.constant 0 : index
    %c0_2 = arith.constant 0 : index
    %3 = vector.load %arg1[%c0_1, %c0_2] : memref<16x128xf32, #tpu.memory_space<vmem>>, vector<16x128xf32>
    %cst_3 = arith.constant 0.000000e+00 : f32
    %4 = vector.broadcast %cst_3 : f32 to vector<16x128xf32>
    %5 = arith.select %2, %3, %4 : vector<16x128xi1>, vector<16x128xf32>
    %6 = arith.extui %2 : vector<16x128xi1> to vector<16x128xi32>
    %7 = arith.sitofp %6 : vector<16x128xi32> to vector<16x128xf32>
    %cst_4 = arith.constant dense<0.000000e+00> : vector<128xf32>
    %8 = vector.multi_reduction <add>, %5, %cst_4 [0] : vector<16x128xf32> to vector<128xf32>
    %9 = vector.shape_cast %8 : vector<128xf32> to vector<1x128xf32>
    %c0_5 = arith.constant 0 : index
    %c0_6 = arith.constant 0 : index
    %c0_7 = arith.constant 0 : index
    %10 = vector.load %arg3[%c0_5, %c0_6, %c0_7] : memref<1x1x128xf32, #tpu.memory_space<vmem>>, vector<1x1x128xf32>
    %11 = vector.shape_cast %10 : vector<1x1x128xf32> to vector<1x128xf32>
    %12 = vector.shape_cast %9 : vector<1x128xf32> to vector<1x1x128xf32>
    tpu.vector_store %arg3[%c0_5, %c0_6, %c0_7], %12 {strides = array<i32>} : memref<1x1x128xf32, #tpu.memory_space<vmem>>, vector<1x1x128xf32>,
    %cst_8 = arith.constant dense<0.000000e+00> : vector<128xf32>
    %13 = vector.multi_reduction <add>, %7, %cst_8 [0] : vector<16x128xf32> to vector<128xf32>
    %14 = vector.shape_cast %13 : vector<128xf32> to vector<1x128xf32>
    %c0_9 = arith.constant 0 : index
    %c0_10 = arith.constant 0 : index
    %c0_11 = arith.constant 0 : index
    %15 = vector.load %arg4[%c0_9, %c0_10, %c0_11] : memref<1x1x128xf32, #tpu.memory_space<vmem>>, vector<1x1x128xf32>
    %16 = vector.shape_cast %15 : vector<1x1x128xf32> to vector<1x128xf32>
    %17 = vector.shape_cast %14 : vector<1x128xf32> to vector<1x1x128xf32>
    tpu.vector_store %arg4[%c0_9, %c0_10, %c0_11], %17 {strides = array<i32>} : memref<1x1x128xf32, #tpu.memory_space<vmem>>, vector<1x1x128xf32>,
    return
  }
  func.func @transform_0(%arg0: i32) -> (i32, i32) {
    %c0_i32 = arith.constant 0 : i32
    %c0_i32_0 = arith.constant 0 : i32
    return %arg0, %c0_i32 : i32, i32
  }
  func.func @transform_1(%arg0: i32) -> (i32, i32) {
    %c0_i32 = arith.constant 0 : i32
    %c0_i32_0 = arith.constant 0 : i32
    return %arg0, %c0_i32 : i32, i32
  }
  func.func @transform_2(%arg0: i32) -> (i32, i32, i32) {
    %c0_i32 = arith.constant 0 : i32
    %c0_i32_0 = arith.constant 0 : i32
    %c0_i32_1 = arith.constant 0 : i32
    return %arg0, %c0_i32, %c0_i32_0 : i32, i32, i32
  }
  func.func @transform_3(%arg0: i32) -> (i32, i32, i32) {
    %c0_i32 = arith.constant 0 : i32
    %c0_i32_0 = arith.constant 0 : i32
    %c0_i32_1 = arith.constant 0 : i32
    return %arg0, %c0_i32, %c0_i32_0 : i32, i32, i32
  }
}

</mosaic_0001>

<bundles_post_ra>
// kernel: slide_window_sum_pallas.1
= control target key start
LH: loop header
LB: loop body
LE: loop exit
PB: predicated region body
PF: predicated region fallthrough
CT: control target
= control target key end

     0   :  { %v52_v6 = vmov 0.0   ;;  %s91_s0 = inlined_call_operand.vmem [shape: f32[16,128], index: 0, kind: input, shape index: {}]   ;;  %s92_s1 = inlined_call_operand.vmem [shape: f32[16,128], index: 1, kind: input, shape index: {}]   ;;  %s93_s2 = inlined_call_operand.vmem [shape: f32[1,1,128], index: 2, kind: output, shape index: {0}]   ;;  %s94_s3 = inlined_call_operand.vmem [shape: f32[1,1,128], index: 3, kind: output, shape index: {1}]  }
   0x1   :  { %v13_v0 = vld [vmem:[%s92_s1] sm:$0xff]  ;;  %v14_v1 = vld [vmem:[%s92_s1 + $0x8] sm:$0xff] }
   0x2   :  { %v17_v2 = vld [vmem:[%s91_s0] sm:$0xff]  ;;  %vm15_vm0 = vcmp.ge.f32.partialorder %v13_v0, 0.0  ;;  %vm16_vm1 = vcmp.ge.f32.partialorder %v14_v1, 0.0  ;;  %v18_v3 = vld [vmem:[%s91_s0 + $0x8] sm:$0xff] }
   0x3   :  { %v19_v4 = vsel %vm15_vm0, %v17_v2, 0.0  ;;  %v20_v5 = vsel %vm16_vm1, %v18_v3, 0.0  ;;  %v49_v7 = vsel %vm15_vm0, 1.0, %v52_v6  ;;  %v50_v8 = vsel %vm16_vm1, 1.0, %v52_v6 }
   0x4   :  { %v25_v9 = vadd.f32 %v20_v5, %v19_v4  ;;  %v33_v10 = vadd.f32 %v50_v8, %v49_v7 }
   0x6   :  { %v26_v11 = vrot.slane %v25_v9, 4  ;;  %v34_v12 = vrot.slane %v33_v10, 4 }
   0x8   :  { %v27_v13 = vadd.f32 %v26_v11, %v25_v9  ;;  %v35_v14 = vadd.f32 %v34_v12, %v33_v10 }
   0xa   :  { %v28_v15 = vrot.slane %v27_v13, 2  ;;  %v36_v16 = vrot.slane %v35_v14, 2 }
   0xc   :  { %v29_v17 = vadd.f32 %v28_v15, %v27_v13  ;;  %v37_v18 = vadd.f32 %v36_v16, %v35_v14 }
   0xe   :  { %v30_v19 = vrot.slane %v29_v17, 1  ;;  %v38_v20 = vrot.slane %v37_v18, 1 }
  0x10   :  { %v31_v21 = vadd.f32 %v30_v19, %v29_v17  ;;  %v39_v22 = vadd.f32 %v38_v20, %v37_v18 }
  0x12   :  { %32 = vst [vmem:[%s93_s2] sm:$0x1] %v31_v21  ;;  %40 = vst [vmem:[%s94_s3] sm:$0x1] %v39_v22 }

</bundles_post_ra>
